<compile_context>
chip_gen: v7x
topology: tpu7x:2x2x1
jax: 0.10.0
libtpu: 0.0.40
codegen_flags: <defaults>
</compile_context>

<pallas_src>
import jax
import jax.numpy as jnp
from jax.experimental import pallas as pl
from jax.experimental.pallas import tpu as pltpu


# ---------------------------------------------------------------------------
# Parameter setup (matches WordPosEnc.__init__; buffer is float32 like torch).
# ---------------------------------------------------------------------------
def make_pe_table(d_model: int, max_len: int = 500, temperature: float = 10000.0,
                  dtype=jnp.float32):
    pos = jnp.arange(0, max_len, dtype=jnp.float32)            # [max_len]
    dim_t = jnp.arange(0, d_model, 2, dtype=jnp.float32)       # [d_model/2]
    div_term = 1.0 / (temperature ** (dim_t / d_model))        # [d_model/2]
    angles = pos[:, None] * div_term[None, :]                  # [max_len, d_model/2]
    pe = jnp.zeros((max_len, d_model), dtype=jnp.float32)
    pe = pe.at[:, 0::2].set(jnp.sin(angles))
    pe = pe.at[:, 1::2].set(jnp.cos(angles))
    return pe.astype(dtype)


# ---------------------------------------------------------------------------
# Kernel body: plain (broadcast) add, promote then cast to the output dtype.
#   path A: x_ref (B, TS, D), pe_ref (TS, D)  -> broadcast over batch
#   path B: x_ref (TS, D),    pe_ref (TS, D)  -> plain 2-D add
# ---------------------------------------------------------------------------
def _add_pe_kernel(x_ref, pe_ref, o_ref):
    o_ref[...] = (x_ref[...] + pe_ref[...]).astype(o_ref.dtype)


# ---------------------------------------------------------------------------
# Per-generation VMEM budget.
# ---------------------------------------------------------------------------
def _physical_vmem_bytes() -> int:
    """Physical VMEM per TensorCore; conservative v7x-safe fallback."""
    try:
        info = pltpu.get_tpu_info()
        for name in ("vmem_capacity_bytes", "vmem_bytes", "vmem_size_bytes"):
            v = getattr(info, name, None)
            if v:
                return int(v)
    except Exception:
        pass
    return 64 * 1024 * 1024  # v7x floor -> safe on every generation


def _vmem_budget():
    """Returns (per-x-tile byte target, vmem_limit_bytes to request)."""
    phys = _physical_vmem_bytes()
    # Leave headroom under physical VMEM for internal scratch / bookkeeping.
    vmem_limit = min((phys * 3) // 4, 96 * 1024 * 1024)   # v7x: 48 MiB, v5e/v6e: 96 MiB
    # Live set ~ 2*x + 2*out + 2*pe tiles = ~6 tiles; budget 1/8 of the limit
    # per tile keeps us comfortably inside it.  v7x -> ~6 MiB, v6e -> ~12 MiB.
    tile_budget = vmem_limit // 8
    return tile_budget, vmem_limit


# ---------------------------------------------------------------------------
# pallas_call wrapper.
# ---------------------------------------------------------------------------
def _add_pe_pallas(x: jax.Array, pe: jax.Array, out_dtype, *,
                   seq_tile: int | None = None, donate_x: bool = False) -> jax.Array:
    """x: [B, S, D]; pe: [max_len, D]. Returns (x + pe[:S][None]).astype(out_dtype)."""
    b, s, d = x.shape
    out_dtype = jnp.dtype(out_dtype)

    # Sublane packing: 8 for 4-byte, 16 for 2-byte, 32 for 1-byte dtypes.
    sublane = max(8,
                  32 // x.dtype.itemsize,
                  32 // out_dtype.itemsize,
                  32 // pe.dtype.itemsize)
    s_pad = ((s + sublane - 1) // sublane) * sublane

    tile_budget, vmem_limit = _vmem_budget()
    itemsize = max(x.dtype.itemsize, out_dtype.itemsize)

    # Small batch: fold the whole batch into one block (one pe load per tile,
    # B x fewer grid steps).  Otherwise: batch-innermost grid, pe stays resident.
    fold_batch = b <= 8
    row_bytes = (b if fold_batch else 1) * d * itemsize

    if seq_tile is not None:
        ts = seq_tile
    else:
        ts = tile_budget // max(1, row_bytes)
    ts = max(sublane, (ts // sublane) * sublane)   # round to sublane multiple
    ts = min(ts, s_pad)                            # never exceed padded S
    grid_s = pl.cdiv(s, ts)

    cost = pl.CostEstimate(
        flops=b * s * d,
        transcendentals=0,
        bytes_accessed=(b * s * d * x.dtype.itemsize          # read x
                        + b * s * d * out_dtype.itemsize       # write out
                        + s * d * pe.dtype.itemsize),          # read pe (resident per tile)
    )

    # Only alias if the caller really donates x and dtypes match.
    io_aliases = {0: 0} if (donate_x and x.dtype == out_dtype) else {}

    if fold_batch:
        compiler_params = pltpu.CompilerParams(
            dimension_semantics=("parallel",),
            vmem_limit_bytes=int(vmem_limit),
        )
        return pl.pallas_call(
            _add_pe_kernel,
            out_shape=jax.ShapeDtypeStruct((b, s, d), out_dtype),
            grid=(grid_s,),
            in_specs=[
                pl.BlockSpec((b, ts, d), lambda si: (0, si, 0)),
                # Full pe table; rows selected by index_map (no wrapper-side slice copy).
                pl.BlockSpec((ts, d), lambda si: (si, 0)),
            ],
            out_specs=pl.BlockSpec((b, ts, d), lambda si: (0, si, 0)),
            compiler_params=compiler_params,
            cost_estimate=cost,
            input_output_aliases=io_aliases,
        )(x, pe)

    # Larger batch: batch axis innermost -> pe block index constant along it,
    # so the pe tile stays resident in VMEM instead of being re-DMAed per step.
    compiler_params = pltpu.CompilerParams(
        dimension_semantics=("parallel", "parallel"),
        vmem_limit_bytes=int(vmem_limit),
    )
    return pl.pallas_call(
        _add_pe_kernel,
        out_shape=jax.ShapeDtypeStruct((b, s, d), out_dtype),
        grid=(grid_s, b),
        in_specs=[
            pl.BlockSpec((pl.Squeezed(), ts, d), lambda si, bi: (bi, si, 0)),
            pl.BlockSpec((ts, d), lambda si, bi: (si, 0)),
        ],
        out_specs=pl.BlockSpec((pl.Squeezed(), ts, d), lambda si, bi: (bi, si, 0)),
        compiler_params=compiler_params,
        cost_estimate=cost,
        input_output_aliases=io_aliases,
    )(x, pe)


# ---------------------------------------------------------------------------
# Forward of WordPosEnc: x [B, S, D], pe [max_len, D] -> x + pe[:S][None].
# Output dtype follows jnp/torch type promotion of (x, pe).
# ---------------------------------------------------------------------------
def word_pos_enc_forward(x: jax.Array, pe: jax.Array, *,
                         seq_tile: int | None = None,
                         donate_x: bool = False) -> jax.Array:
    b, s, d = x.shape
    max_len, d_pe = pe.shape
    if d_pe != d:
        raise ValueError(f"pe d_model {d_pe} != x d_model {d}")
    if s > max_len:
        raise ValueError(f"seq_len {s} exceeds max_len {max_len}")

    # Match PyTorch's `x + self.pe[:len]` type promotion (e.g. bf16 + f32 -> f32).
    out_dtype = jnp.promote_types(x.dtype, pe.dtype)

    # Lane-dense folding for narrow d_model: fold `k` consecutive sequence rows
    # into one 128-wide row.  Both reshapes are free (row-major, no copy), and
    # pe.reshape(max_len//k, k*d)[r] == pe[r*k:(r+1)*k].flatten(), so the add
    # stays exact — it just turns masked partial stores into full-lane vst.
    fold = 1
    if d < 128 and 128 % d == 0:
        k = 128 // d
        if s % k == 0 and max_len % k == 0:
            fold = k

    if fold > 1:
        x_in = x.reshape(b, s // fold, fold * d)
        pe_in = pe.reshape(max_len // fold, fold * d)
        out = _add_pe_pallas(x_in, pe_in, out_dtype,
                             seq_tile=seq_tile, donate_x=donate_x)
        return out.reshape(b, s, d)

    return _add_pe_pallas(x, pe, out_dtype, seq_tile=seq_tile, donate_x=donate_x)


# ---------------------------------------------------------------------------
# Self-test
# ---------------------------------------------------------------------------
if __name__ == "__main__":
    base_key = jax.random.PRNGKey(0)

    def run_check(b, s, d, *, max_len=500, dtype=jnp.float32, seq_tile=None):
        key = jax.random.fold_in(base_key, b * 1_000_000 + s * 1_000 + d)
        x = jax.random.normal(key, (b, s, d), dtype=jnp.float32).astype(dtype)
        pe = make_pe_table(d_model=d, max_len=max_len)

        out = jax.block_until_ready(
            word_pos_enc_forward(x, pe, seq_tile=seq_tile))

        ref = x + pe[:s, :][None, :, :]          # jnp promotion == torch promotion
        assert out.shape == (b, s, d), (out.shape, (b, s, d))
        assert out.dtype == ref.dtype, (out.dtype, ref.dtype)
        assert jnp.allclose(out, ref, atol=1e-6), f"mismatch at shape {(b, s, d)} {dtype}"

    # Canonical small shape from the module: batch=2, seq=8, d_model=32
    # (narrow-d folded path, batch-folded single tile).
    run_check(2, 8, 32)

    # Narrow-d folded path with multiple sequence tiles and a padded tail tile.
    run_check(2, 80, 32, seq_tile=8)

    # d_model >= 128 (no folding) with multiple sequence tiles + padded tail tile.
    run_check(2, 20, 128, seq_tile=8)

    # Larger batch -> batch-innermost grid path (pe tile resident in VMEM).
    run_check(16, 16, 64)

    # bf16 input: in-kernel promotion to f32 output (matches torch semantics).
    run_check(2, 64, 32, dtype=jnp.bfloat16)

    print("KERNEL_OK")
</pallas_src>

<mosaic_0001>
module attributes {stable_mosaic.version = 11 : i64} {
  func.func @_add_pe_kernel(%arg0: i32, %arg1: memref<2x8x128xf32, #tpu.memory_space<vmem>>, %arg2: memref<8x128xf32, #tpu.memory_space<vmem>>, %arg3: memref<2x8x128xf32, #tpu.memory_space<vmem>>) attributes {dimension_semantics = [#tpu.dimension_semantics<parallel>], iteration_bounds = array<i64: 1>, scalar_prefetch = 0 : i64, scratch_operands = 0 : i64, tpu.core_type = #tpu.core_type<tc>, window_params = [{transform_indices = @transform_0, window_bounds = array<i64: 2, 8, 128>}, {transform_indices = @transform_1, window_bounds = array<i64: 8, 128>}, {transform_indices = @transform_2, window_bounds = array<i64: 2, 8, 128>}]} {
    %c0 = arith.constant 0 : index
    %c0_0 = arith.constant 0 : index
    %c0_1 = arith.constant 0 : index
    %0 = vector.load %arg1[%c0, %c0_0, %c0_1] : memref<2x8x128xf32, #tpu.memory_space<vmem>>, vector<2x8x128xf32>
    %c0_2 = arith.constant 0 : index
    %c0_3 = arith.constant 0 : index
    %1 = vector.load %arg2[%c0_2, %c0_3] : memref<8x128xf32, #tpu.memory_space<vmem>>, vector<8x128xf32>
    %2 = vector.shape_cast %1 : vector<8x128xf32> to vector<1x8x128xf32>
    %3 = vector.broadcast %2 : vector<1x8x128xf32> to vector<2x8x128xf32>
    %4 = arith.addf %0, %3 : vector<2x8x128xf32>
    %c0_4 = arith.constant 0 : index
    %c0_5 = arith.constant 0 : index
    %c0_6 = arith.constant 0 : index
    %5 = vector.load %arg3[%c0_4, %c0_5, %c0_6] : memref<2x8x128xf32, #tpu.memory_space<vmem>>, vector<2x8x128xf32>
    tpu.vector_store %arg3[%c0_4, %c0_5, %c0_6], %4 {strides = array<i32>} : memref<2x8x128xf32, #tpu.memory_space<vmem>>, vector<2x8x128xf32>,
    return
  }
  func.func @transform_0(%arg0: i32) -> (i32, i32, i32) {
    %c0_i32 = arith.constant 0 : i32
    %c0_i32_0 = arith.constant 0 : i32
    %c0_i32_1 = arith.constant 0 : i32
    return %c0_i32, %arg0, %c0_i32_0 : i32, i32, i32
  }
  func.func @transform_1(%arg0: i32) -> (i32, i32) {
    %c0_i32 = arith.constant 0 : i32
    %c0_i32_0 = arith.constant 0 : i32
    return %arg0, %c0_i32 : i32, i32
  }
  func.func @transform_2(%arg0: i32) -> (i32, i32, i32) {
    %c0_i32 = arith.constant 0 : i32
    %c0_i32_0 = arith.constant 0 : i32
    %c0_i32_1 = arith.constant 0 : i32
    return %c0_i32, %arg0, %c0_i32_0 : i32, i32, i32
  }
}

</mosaic_0001>

<bundles_post_ra>
// kernel: tpu_custom_call.1
= control target key start
LH: loop header
LB: loop body
LE: loop exit
PB: predicated region body
PF: predicated region fallthrough
CT: control target
= control target key end

     0   :  { %7 = vsyncpa [#allocation3], 0  ;;  %s215_s0 = inlined_call_operand.hbm [shape: f32[2,2,128], index: 0, kind: input, shape index: {}]   ;;  %s216_s1 = inlined_call_operand.hbm [shape: f32[125,128], index: 1, kind: input, shape index: {}]   ;;  %s217_s2 = inlined_call_operand.hbm [shape: f32[2,2,128], index: 2, kind: output, shape index: {}]  }
   0x1   :  { %8 = vsyncpa [#allocation6], 0 }
   0x2   :  { %9 = vsyncpa [#allocation4], 0 }
   0x3   :  { %14 = vsyncadd [#allocation3], 192  ;;  %s19_s9 = sld [smem:[#allocation0]]   ;;  %s163_s10 = smov [#allocation2]  }
   0x4   :  { %s27_s11 = sshll.u32 %s163_s10, 4  ;;  %s164_s12 = smov 32   ;;  %s28_s11 = int_to_ptr.vmem [resolvable:$true] %s27_s11 }
   0x5   :  { %34 = sst [smem:[#allocation9]] %s164_s12  ;;  %s165_s13 = smov 128  }
   0x6   :  { %36 = sst [smem:[#allocation9 + $0x1]] %s165_s13  ;;  %s166_s14 = smov 1  }
   0x7   :  { %38 = sst [smem:[#allocation9 + $0x2]] %s166_s14  ;;  %s167_s17 = smov 2  }
   0x8   :  { %40 = sst [smem:[#allocation9 + $0x3]] %s164_s12  ;;  %s168_s18 = smov [#allocation3]  }
   0x9   :  { %s117_s15 = sshll.u32 %s19_s9, 26  ;;  %42 = sst [smem:[#allocation9 + $0x4]] %s164_s12 }
   0xa   :  { %s118_s16 = sadd.s32 134217728, %s117_s15  ;;  %44 = sst [smem:[#allocation9 + $0x5]] %s167_s17 }
   0xb   :  { %s169_s19 = smov [#allocation8]   ;;  %s170_s22 = smov [#allocation5]  }
   0xc   :  { %46 = dma.general %s215_s0, 64, %s28_s11, %s168_s18, %s169_s19, [#allocation9], %s118_s16, 0  }
   0xd   :  { %s53_s23 = sshll.u32 %s170_s22, 4  ;;  %s135_s26 = scalar_lea.hbm %s216_s1, 128  ;;  %s54_s23 = int_to_ptr.vmem [resolvable:$true] %s53_s23 }
   0xe   :  { %p136_p0 = scmp.ne.s32.totalorder %s216_s1, %s135_s26  ;;  %s137_s3 = scalar_lea.hbm %s216_s1, 2048 }
   0xf   :  { %p138_p1 = scmp.lt.u32.totalorder %s137_s3, %s135_s26  ;;  %p139_p2 = scmp.lt.u32.totalorder %s135_s26, %s216_s1 }
  0x11   :  { %p140_p3 = por %p139_p2, %p138_p1 }
  0x13   :  { %p141_p4 = pnand %p140_p3, %p136_p0 }
  0x15   :  { %144 = shalt.err (!%p141_p4)
}
  0x16   :  { %s145_s0 = scalar_lea.vmem %s54_s23, 128  ;;  %p150_p6 = scmp.lt.s32.totalorder %s54_s23, %s54_s23 }
  0x17   :  { %p146_p5 = scmp.ne.s32.totalorder %s54_s23, %s145_s0  ;;  %p151_p7 = scmp.lt.s32.totalorder %s145_s0, %s145_s0 }
  0x19   :  { %p152_p8 = por %p151_p7, %p150_p6 }
  0x1b   :  { %p153_p9 = pnand %p152_p8, %p146_p5 }
  0x1d   :  { %156 = shalt.err (!%p153_p9)
}
  0x1e   :  { %56 = dma.hbm_to_vmem [thread:$0]  %s216_s1, 128, %s54_s23, [#allocation6]  }
  0x1f   :  { %157 = dma.done.wait [#allocation3], 256  }
  0x20   :  { %158 = vsyncadd [#allocation3], 4294967040 }
  0x21   :  { %159 = dma.done.wait [#allocation6], 128  }
  0x22   :  { %160 = vsyncadd [#allocation6], 4294967168  ;;  %v63_v0 = vld [vmem:[#allocation2] sm:$0xff]  ;;  %v65_v1 = vld [vmem:[#allocation5] sm:$0xff] }
  0x23   :  { %v64_v2 = vld [vmem:[#allocation2 + $0x8] sm:$0xff]  ;;  %v66_v3 = vadd.f32 %v65_v1, %v63_v0 }
  0x24   :  { %v67_v4 = vadd.f32 %v65_v1, %v64_v2 }
  0x25   :  { %68 = vst [vmem:[#allocation7] sm:$0xff] %v66_v3 }
  0x26   :  { %69 = vst [vmem:[#allocation7 + $0x8] sm:$0xff] %v67_v4 }
  0x27   :  { %74 = vsyncadd [#allocation4], 192  ;;  %s171_s8 = smov [#allocation7]   ;;  %s172_s10 = smov 128  }
  0x28   :  { %s91_s9 = sshll.u32 %s171_s8, 4  ;;  %98 = sst [smem:[#allocation11]] %s172_s10  ;;  %s92_s9 = int_to_ptr.vmem [resolvable:$true] %s91_s9 }
  0x29   :  { %s173_s11 = smov 32   ;;  %s174_s1 = smov 1  }
  0x2a   :  { %100 = sst [smem:[#allocation11 + $0x1]] %s173_s11  ;;  %s175_s12 = smov 2  }
  0x2b   :  { %102 = sst [smem:[#allocation11 + $0x2]] %s174_s1  ;;  %s176_s13 = smov [#allocation4]  }
  0x2c   :  { %104 = sst [smem:[#allocation11 + $0x3]] %s173_s11  ;;  %s177_s14 = smov [#allocation10]  }
  0x2d   :  { %106 = sst [smem:[#allocation11 + $0x4]] %s173_s11  ;;  %s178_s15 = smov 0  }
  0x2e   :  { %108 = sst [smem:[#allocation11 + $0x5]] %s175_s12 }
  0x2f   :  { %110 = dma.general %s92_s9, 64, %s217_s2, %s176_s13, %s177_s14, [#allocation11], %s178_s15, 0  }
  0x30   :  { %161 = dma.done.wait [#allocation4], 256  }
  0x31   :  { %162 = vsyncadd [#allocation4], 4294967040 }
  0x32   :  { %114 = vsyncpa [#allocation3], 1 }
  0x33   :  { %115 = vsyncpa [#allocation6], 1 }
  0x34   :  { %116 = vsyncpa [#allocation4], 1 }

</bundles_post_ra>
